<compile_context>
chip_gen: v7x
topology: tpu7x:2x2x1
jax: 0.10.0
libtpu: 0.0.40
codegen_flags: <defaults>
</compile_context>

<pallas_src>
import jax
import jax.numpy as jnp
import numpy as np
from jax.experimental import pallas as pl
from jax.experimental.pallas import tpu as pltpu


def _make_edge_loss_kernel(level, h, w):
    """Builds kernel(img1_block, img2_block, out_block, pyr_scratch).

    img*_block : (block_nc, H, W) in the input dtype (upcast to f32 in-kernel)
    out_block  : (1, out_rows, 128) f32 partial sums for this block:
                 out[0, 2*l, :]   = sum |grad_H(d_l)|   (broadcast over lanes)
                 out[0, 2*l+1, :] = sum |grad_W(d_l)|
    pyr_scratch: (block_nc, H, W) f32 — holds d = img1 - img2 so higher pyramid
                 levels are fetched with strided (cheap, in-VMEM) row loads.
    """

    def kernel(a_ref, b_ref, out_ref, pyr_ref):
        # One unmasked store zero-initializes the whole lane-dense output tile.
        out_ref[...] = jnp.zeros(out_ref.shape, jnp.float32)

        # Single subtraction; everything below operates on d = img1 - img2.
        d = a_ref[...].astype(jnp.float32) - b_ref[...].astype(jnp.float32)

        if level > 1:
            pyr_ref[...] = d                       # f32 pyramid source
            col = jax.lax.broadcasted_iota(jnp.int32, (1, w), 1)

        hl, wl = h, w                              # level-l spatial dims
        for l in range(level):
            s = 1 << l
            gx = jnp.float32(0.0)
            gy = jnp.float32(0.0)

            if hl >= 1 and wl >= 1:
                if l == 0:
                    cur = d                        # full-resolution level
                    if hl >= 2:
                        gx = jnp.sum(jnp.abs(cur[:, 1:, :] - cur[:, :-1, :]))
                    if wl >= 2:
                        gy = jnp.sum(jnp.abs(cur[:, :, 1:] - cur[:, :, :-1]))
                else:
                    # Level-l rows live at level-0 rows {0, s, 2s, ...}:
                    # a sublane-strided load from the f32 scratch (cost ~1/2^l).
                    cur = pyr_ref[:, pl.ds(0, hl, s), :]          # (bnc, hl, W)
                    # Level-l columns on the level-0 lane grid: tiny (1, W) weights.
                    on_grid = (col & (s - 1)) == 0
                    if hl >= 2:
                        wx = (on_grid & (col < wl * s)).astype(jnp.float32)
                        dh = cur[:, 1:, :] - cur[:, :-1, :]       # (bnc, hl-1, W)
                        gx = jnp.sum(jnp.abs(dh) * wx)
                    if wl >= 2:
                        wy = (on_grid & (col < (wl - 1) * s)).astype(jnp.float32)
                        dw = cur[:, :, s:] - cur[:, :, :-s]       # (bnc, hl, W-s)
                        gy = jnp.sum(jnp.abs(dw) * wy[:, : w - s])

            out_ref[:, 2 * l:2 * l + 1, :] = jnp.zeros((1, 1, 128), jnp.float32) + gx
            out_ref[:, 2 * l + 1:2 * l + 2, :] = jnp.zeros((1, 1, 128), jnp.float32) + gy

            hl //= 2
            wl //= 2

    return kernel


def multi_scale_edge_loss(img1, img2, level=3):
    """img1, img2: (N, C, H, W). Returns scalar f32 loss."""
    n, c, h, w = img1.shape
    nc = n * c
    # Pure metadata reshape; NO dtype cast here (cast happens inside the kernel).
    x1 = img1.reshape(nc, h, w)
    x2 = img2.reshape(nc, h, w)

    # Block over the N*C axis.  Target ~2 MiB of f32 per input block:
    #   2 inputs x 2 pipeline buffers + f32 pyramid scratch + temporaries ~ 16 MiB,
    # comfortably inside the 40 MiB scoped limit on all generations (v7x: 64 MiB
    # physical).  bnc is a divisor of nc, so there is no jnp.pad / extra HBM pass,
    # and we force >= 2 grid steps so v7x's second TensorCore is never idle.
    slice_bytes = h * w * 4
    target_block_bytes = 2 << 20
    max_bnc = max(1, target_block_bytes // max(slice_bytes, 1))
    if nc >= 2:
        max_bnc = min(max_bnc, nc // 2)
    max_bnc = max(1, min(max_bnc, nc))
    bnc = 1
    for cand in range(max_bnc, 0, -1):
        if nc % cand == 0:
            bnc = cand
            break
    g = nc // bnc
    # TODO(synk): add H-tiling with a 2^(level-1)-row halo for very large planes
    # where a single (1, H, W) slice exceeds a few MiB (bnc=1 fallback today).

    out_rows = max(8, ((2 * level + 7) // 8) * 8)   # (8,128)-aligned output tile

    elems = nc * h * w
    cost = pl.CostEstimate(
        flops=16 * elems,
        transcendentals=0,
        bytes_accessed=2 * elems * img1.dtype.itemsize + g * out_rows * 128 * 4,
    )

    partial = pl.pallas_call(
        _make_edge_loss_kernel(level, h, w),
        out_shape=jax.ShapeDtypeStruct((g, out_rows, 128), jnp.float32),
        grid=(g,),
        in_specs=[
            pl.BlockSpec((bnc, h, w), lambda i: (i, 0, 0)),
            pl.BlockSpec((bnc, h, w), lambda i: (i, 0, 0)),
        ],
        out_specs=pl.BlockSpec((1, out_rows, 128), lambda i: (i, 0, 0)),
        scratch_shapes=[pltpu.VMEM((bnc, h, w), jnp.float32)],
        compiler_params=pltpu.CompilerParams(
            dimension_semantics=("parallel",),
            vmem_limit_bytes=40 * 1024 * 1024,
        ),
        cost_estimate=cost,
    )(x1, x2)

    # Tiny final reduction + per-level mean normalization in JAX.
    sums = jnp.sum(partial[:, : 2 * level, 0], axis=0)        # (2*level,)

    hl, wl = h, w
    gx_terms, gy_terms = [], []
    for l in range(level):
        cnt_x = nc * max(hl - 1, 0) * wl          # grad_H element count at level l
        cnt_y = nc * hl * max(wl - 1, 0)          # grad_W element count at level l
        # Degenerate levels (count 0) yield NaN, matching torch.mean of an empty
        # tensor in the reference.
        gx_terms.append(sums[2 * l] / cnt_x)
        gy_terms.append(sums[2 * l + 1] / cnt_y)
        hl //= 2
        wl //= 2
    gx = sum(gx_terms) / level
    gy = sum(gy_terms) / level
    return (gx + gy) * 0.5


def _reference(img1, img2, level=3):
    """Pure-JAX reference mirroring the PyTorch module exactly."""
    gx_losses, gy_losses = [], []
    a, b = img1.astype(jnp.float32), img2.astype(jnp.float32)
    for _ in range(level):
        gxa = a[:, :, 1:, :] - a[:, :, :-1, :]
        gya = a[:, :, :, 1:] - a[:, :, :, :-1]
        gxb = b[:, :, 1:, :] - b[:, :, :-1, :]
        gyb = b[:, :, :, 1:] - b[:, :, :, :-1]
        gx_losses.append(jnp.mean(jnp.abs(gxa - gxb)))
        gy_losses.append(jnp.mean(jnp.abs(gya - gyb)))
        h, w = a.shape[2], a.shape[3]
        a = a[:, :, 0:2 * (h // 2):2, 0:2 * (w // 2):2]   # nearest, scale 0.5
        b = b[:, :, 0:2 * (h // 2):2, 0:2 * (w // 2):2]
    gx = sum(gx_losses) / len(gx_losses)
    gy = sum(gy_losses) / len(gy_losses)
    return (gx + gy) / 2


if __name__ == "__main__":
    key = jax.random.PRNGKey(0)
    k1, k2 = jax.random.split(key)

    loss_fn = jax.jit(multi_scale_edge_loss, static_argnames=("level",))

    # Main small test: (N, C, H, W) = (2, 4, 16, 16).
    img1 = jax.random.normal(k1, (2, 4, 16, 16), dtype=jnp.float32)
    img2 = jax.random.normal(k2, (2, 4, 16, 16), dtype=jnp.float32)
    loss = jax.block_until_ready(loss_fn(img1, img2, level=3))
    ref = jax.block_until_ready(_reference(img1, img2, level=3))
    assert np.allclose(np.asarray(loss), np.asarray(ref), rtol=1e-5, atol=1e-6), (
        float(loss), float(ref))

    # Regression test: odd / non-power-of-two spatial dims (floor-halving pyramid).
    k3, k4 = jax.random.split(k2)
    o1 = jax.random.normal(k3, (1, 3, 19, 13), dtype=jnp.float32)
    o2 = jax.random.normal(k4, (1, 3, 19, 13), dtype=jnp.float32)
    loss_o = jax.block_until_ready(loss_fn(o1, o2, level=3))
    ref_o = jax.block_until_ready(_reference(o1, o2, level=3))
    assert np.allclose(np.asarray(loss_o), np.asarray(ref_o), rtol=1e-5, atol=1e-6), (
        float(loss_o), float(ref_o))

    print("KERNEL_OK")
</pallas_src>

<mosaic_0001>
module attributes {stable_mosaic.version = 11 : i64} {
  func.func @kernel(%arg0: i32, %arg1: memref<4x16x16xf32, #tpu.memory_space<vmem>>, %arg2: memref<4x16x16xf32, #tpu.memory_space<vmem>>, %arg3: memref<1x8x128xf32, #tpu.memory_space<vmem>>, %arg4: memref<4x16x16xf32, #tpu.memory_space<vmem>>) attributes {dimension_semantics = [#tpu.dimension_semantics<parallel>], iteration_bounds = array<i64: 2>, scalar_prefetch = 0 : i64, scratch_operands = 1 : i64, tpu.core_type = #tpu.core_type<tc>, window_params = [{transform_indices = @transform_0, window_bounds = array<i64: 4, 16, 16>}, {transform_indices = @transform_1, window_bounds = array<i64: 4, 16, 16>}, {transform_indices = @transform_2, window_bounds = array<i64: 1, 8, 128>}]} {
    %cst = arith.constant 0.000000e+00 : f32
    %0 = vector.broadcast %cst : f32 to vector<1x8x128xf32>
    %c0 = arith.constant 0 : index
    %c0_0 = arith.constant 0 : index
    %c0_1 = arith.constant 0 : index
    %1 = vector.load %arg3[%c0, %c0_0, %c0_1] : memref<1x8x128xf32, #tpu.memory_space<vmem>>, vector<1x8x128xf32>
    tpu.vector_store %arg3[%c0, %c0_0, %c0_1], %0 {strides = array<i32>} : memref<1x8x128xf32, #tpu.memory_space<vmem>>, vector<1x8x128xf32>,
    %c0_2 = arith.constant 0 : index
    %c0_3 = arith.constant 0 : index
    %c0_4 = arith.constant 0 : index
    %2 = vector.load %arg1[%c0_2, %c0_3, %c0_4] : memref<4x16x16xf32, #tpu.memory_space<vmem>>, vector<4x16x16xf32>
    %c0_5 = arith.constant 0 : index
    %c0_6 = arith.constant 0 : index
    %c0_7 = arith.constant 0 : index
    %3 = vector.load %arg2[%c0_5, %c0_6, %c0_7] : memref<4x16x16xf32, #tpu.memory_space<vmem>>, vector<4x16x16xf32>
    %4 = arith.subf %2, %3 : vector<4x16x16xf32>
    %c0_8 = arith.constant 0 : index
    %c0_9 = arith.constant 0 : index
    %c0_10 = arith.constant 0 : index
    %5 = vector.load %arg4[%c0_8, %c0_9, %c0_10] : memref<4x16x16xf32, #tpu.memory_space<vmem>>, vector<4x16x16xf32>
    tpu.vector_store %arg4[%c0_8, %c0_9, %c0_10], %4 {strides = array<i32>} : memref<4x16x16xf32, #tpu.memory_space<vmem>>, vector<4x16x16xf32>,
    %6 = tpu.iota {dimensions = array<i32: 1>} : vector<1x16xi32>
    %7 = vector.extract_strided_slice %4 {offsets = [0, 1, 0], sizes = [4, 15, 16], strides = [1, 1, 1]} : vector<4x16x16xf32> to vector<4x15x16xf32>
    %8 = vector.extract_strided_slice %4 {offsets = [0, 0, 0], sizes = [4, 15, 16], strides = [1, 1, 1]} : vector<4x16x16xf32> to vector<4x15x16xf32>
    %9 = arith.subf %7, %8 : vector<4x15x16xf32>
    %10 = math.absf %9 : vector<4x15x16xf32>
    %11 = vector.shape_cast %10 : vector<4x15x16xf32> to vector<1x4x15x16xf32>
    %cst_11 = arith.constant dense<0.000000e+00> : vector<1xf32>
    %12 = vector.multi_reduction <add>, %11, %cst_11 [1, 2, 3] : vector<1x4x15x16xf32> to vector<1xf32>
    %13 = vector.shape_cast %12 : vector<1xf32> to vector<1x1x1x1xf32>
    %14 = vector.extract %13[0, 0, 0, 0] : f32 from vector<1x1x1x1xf32>
    %15 = vector.extract_strided_slice %4 {offsets = [0, 0, 1], sizes = [4, 16, 15], strides = [1, 1, 1]} : vector<4x16x16xf32> to vector<4x16x15xf32>
    %16 = vector.extract_strided_slice %4 {offsets = [0, 0, 0], sizes = [4, 16, 15], strides = [1, 1, 1]} : vector<4x16x16xf32> to vector<4x16x15xf32>
    %17 = arith.subf %15, %16 : vector<4x16x15xf32>
    %18 = math.absf %17 : vector<4x16x15xf32>
    %19 = vector.shape_cast %18 : vector<4x16x15xf32> to vector<1x4x16x15xf32>
    %cst_12 = arith.constant dense<0.000000e+00> : vector<1xf32>
    %20 = vector.multi_reduction <add>, %19, %cst_12 [1, 2, 3] : vector<1x4x16x15xf32> to vector<1xf32>
    %21 = vector.shape_cast %20 : vector<1xf32> to vector<1x1x1x1xf32>
    %22 = vector.extract %21[0, 0, 0, 0] : f32 from vector<1x1x1x1xf32>
    %cst_13 = arith.constant 0.000000e+00 : f32
    %23 = vector.broadcast %cst_13 : f32 to vector<1x1x128xf32>
    %24 = vector.broadcast %14 : f32 to vector<1x1x128xf32>
    %25 = arith.addf %23, %24 : vector<1x1x128xf32>
    %c0_14 = arith.constant 0 : index
    %c0_15 = arith.constant 0 : index
    %c0_16 = arith.constant 0 : index
    %26 = vector.load %arg3[%c0_14, %c0_15, %c0_16] : memref<1x8x128xf32, #tpu.memory_space<vmem>>, vector<1x1x128xf32>
    tpu.vector_store %arg3[%c0_14, %c0_15, %c0_16], %25 {strides = array<i32>} : memref<1x8x128xf32, #tpu.memory_space<vmem>>, vector<1x1x128xf32>,
    %cst_17 = arith.constant 0.000000e+00 : f32
    %27 = vector.broadcast %cst_17 : f32 to vector<1x1x128xf32>
    %28 = vector.broadcast %22 : f32 to vector<1x1x128xf32>
    %29 = arith.addf %27, %28 : vector<1x1x128xf32>
    %c0_18 = arith.constant 0 : index
    %c1 = arith.constant 1 : index
    %c0_19 = arith.constant 0 : index
    %30 = vector.load %arg3[%c0_18, %c1, %c0_19] : memref<1x8x128xf32, #tpu.memory_space<vmem>>, vector<1x1x128xf32>
    tpu.vector_store %arg3[%c0_18, %c1, %c0_19], %29 {strides = array<i32>} : memref<1x8x128xf32, #tpu.memory_space<vmem>>, vector<1x1x128xf32>,
    %c0_20 = arith.constant 0 : index
    %c0_21 = arith.constant 0 : index
    %c0_22 = arith.constant 0 : index
    %31 = tpu.strided_load %arg4[%c0_20, %c0_21, %c0_22] {strides = array<i32: 1, 2, 1>} : memref<4x16x16xf32, #tpu.memory_space<vmem>>, vector<4x8x16xf32>
    %c1_i32 = arith.constant 1 : i32
    %32 = vector.broadcast %c1_i32 : i32 to vector<1x16xi32>
    %33 = arith.andi %6, %32 : vector<1x16xi32>
    %c0_i32 = arith.constant 0 : i32
    %34 = vector.broadcast %c0_i32 : i32 to vector<1x16xi32>
    %35 = arith.cmpi eq, %33, %34 : vector<1x16xi32>
    %c16_i32 = arith.constant 16 : i32
    %36 = vector.broadcast %c16_i32 : i32 to vector<1x16xi32>
    %37 = arith.cmpi slt, %6, %36 : vector<1x16xi32>
    %38 = arith.andi %35, %37 : vector<1x16xi1>
    %39 = arith.extui %38 : vector<1x16xi1> to vector<1x16xi32>
    %40 = arith.sitofp %39 : vector<1x16xi32> to vector<1x16xf32>
    %41 = vector.extract_strided_slice %31 {offsets = [0, 1, 0], sizes = [4, 7, 16], strides = [1, 1, 1]} : vector<4x8x16xf32> to vector<4x7x16xf32>
    %42 = vector.extract_strided_slice %31 {offsets = [0, 0, 0], sizes = [4, 7, 16], strides = [1, 1, 1]} : vector<4x8x16xf32> to vector<4x7x16xf32>
    %43 = arith.subf %41, %42 : vector<4x7x16xf32>
    %44 = math.absf %43 : vector<4x7x16xf32>
    %45 = vector.shape_cast %40 : vector<1x16xf32> to vector<1x1x16xf32>
    %46 = vector.broadcast %45 : vector<1x1x16xf32> to vector<4x7x16xf32>
    %47 = arith.mulf %44, %46 : vector<4x7x16xf32>
    %48 = vector.shape_cast %47 : vector<4x7x16xf32> to vector<1x4x7x16xf32>
    %cst_23 = arith.constant dense<0.000000e+00> : vector<1xf32>
    %49 = vector.multi_reduction <add>, %48, %cst_23 [1, 2, 3] : vector<1x4x7x16xf32> to vector<1xf32>
    %50 = vector.shape_cast %49 : vector<1xf32> to vector<1x1x1x1xf32>
    %51 = vector.extract %50[0, 0, 0, 0] : f32 from vector<1x1x1x1xf32>
    %c14_i32 = arith.constant 14 : i32
    %52 = vector.broadcast %c14_i32 : i32 to vector<1x16xi32>
    %53 = arith.cmpi slt, %6, %52 : vector<1x16xi32>
    %54 = arith.andi %35, %53 : vector<1x16xi1>
    %55 = arith.extui %54 : vector<1x16xi1> to vector<1x16xi32>
    %56 = arith.sitofp %55 : vector<1x16xi32> to vector<1x16xf32>
    %57 = vector.extract_strided_slice %31 {offsets = [0, 0, 2], sizes = [4, 8, 14], strides = [1, 1, 1]} : vector<4x8x16xf32> to vector<4x8x14xf32>
    %58 = vector.extract_strided_slice %31 {offsets = [0, 0, 0], sizes = [4, 8, 14], strides = [1, 1, 1]} : vector<4x8x16xf32> to vector<4x8x14xf32>
    %59 = arith.subf %57, %58 : vector<4x8x14xf32>
    %60 = math.absf %59 : vector<4x8x14xf32>
    %61 = vector.extract_strided_slice %56 {offsets = [0, 0], sizes = [1, 14], strides = [1, 1]} : vector<1x16xf32> to vector<1x14xf32>
    %62 = vector.shape_cast %61 : vector<1x14xf32> to vector<1x1x14xf32>
    %63 = vector.broadcast %62 : vector<1x1x14xf32> to vector<4x8x14xf32>
    %64 = arith.mulf %60, %63 : vector<4x8x14xf32>
    %65 = vector.shape_cast %64 : vector<4x8x14xf32> to vector<1x4x8x14xf32>
    %cst_24 = arith.constant dense<0.000000e+00> : vector<1xf32>
    %66 = vector.multi_reduction <add>, %65, %cst_24 [1, 2, 3] : vector<1x4x8x14xf32> to vector<1xf32>
    %67 = vector.shape_cast %66 : vector<1xf32> to vector<1x1x1x1xf32>
    %68 = vector.extract %67[0, 0, 0, 0] : f32 from vector<1x1x1x1xf32>
    %cst_25 = arith.constant 0.000000e+00 : f32
    %69 = vector.broadcast %cst_25 : f32 to vector<1x1x128xf32>
    %70 = vector.broadcast %51 : f32 to vector<1x1x128xf32>
    %71 = arith.addf %69, %70 : vector<1x1x128xf32>
    %c0_26 = arith.constant 0 : index
    %c2 = arith.constant 2 : index
    %c0_27 = arith.constant 0 : index
    %72 = vector.load %arg3[%c0_26, %c2, %c0_27] : memref<1x8x128xf32, #tpu.memory_space<vmem>>, vector<1x1x128xf32>
    tpu.vector_store %arg3[%c0_26, %c2, %c0_27], %71 {strides = array<i32>} : memref<1x8x128xf32, #tpu.memory_space<vmem>>, vector<1x1x128xf32>,
    %cst_28 = arith.constant 0.000000e+00 : f32
    %73 = vector.broadcast %cst_28 : f32 to vector<1x1x128xf32>
    %74 = vector.broadcast %68 : f32 to vector<1x1x128xf32>
    %75 = arith.addf %73, %74 : vector<1x1x128xf32>
    %c0_29 = arith.constant 0 : index
    %c3 = arith.constant 3 : index
    %c0_30 = arith.constant 0 : index
    %76 = vector.load %arg3[%c0_29, %c3, %c0_30] : memref<1x8x128xf32, #tpu.memory_space<vmem>>, vector<1x1x128xf32>
    tpu.vector_store %arg3[%c0_29, %c3, %c0_30], %75 {strides = array<i32>} : memref<1x8x128xf32, #tpu.memory_space<vmem>>, vector<1x1x128xf32>,
    %c0_31 = arith.constant 0 : index
    %c0_32 = arith.constant 0 : index
    %c0_33 = arith.constant 0 : index
    %77 = tpu.strided_load %arg4[%c0_31, %c0_32, %c0_33] {strides = array<i32: 1, 4, 1>} : memref<4x16x16xf32, #tpu.memory_space<vmem>>, vector<4x4x16xf32>
    %c3_i32 = arith.constant 3 : i32
    %78 = vector.broadcast %c3_i32 : i32 to vector<1x16xi32>
    %79 = arith.andi %6, %78 : vector<1x16xi32>
    %c0_i32_34 = arith.constant 0 : i32
    %80 = vector.broadcast %c0_i32_34 : i32 to vector<1x16xi32>
    %81 = arith.cmpi eq, %79, %80 : vector<1x16xi32>
    %c16_i32_35 = arith.constant 16 : i32
    %82 = vector.broadcast %c16_i32_35 : i32 to vector<1x16xi32>
    %83 = arith.cmpi slt, %6, %82 : vector<1x16xi32>
    %84 = arith.andi %81, %83 : vector<1x16xi1>
    %85 = arith.extui %84 : vector<1x16xi1> to vector<1x16xi32>
    %86 = arith.sitofp %85 : vector<1x16xi32> to vector<1x16xf32>
    %87 = vector.extract_strided_slice %77 {offsets = [0, 1, 0], sizes = [4, 3, 16], strides = [1, 1, 1]} : vector<4x4x16xf32> to vector<4x3x16xf32>
    %88 = vector.extract_strided_slice %77 {offsets = [0, 0, 0], sizes = [4, 3, 16], strides = [1, 1, 1]} : vector<4x4x16xf32> to vector<4x3x16xf32>
    %89 = arith.subf %87, %88 : vector<4x3x16xf32>
    %90 = math.absf %89 : vector<4x3x16xf32>
    %91 = vector.shape_cast %86 : vector<1x16xf32> to vector<1x1x16xf32>
    %92 = vector.broadcast %91 : vector<1x1x16xf32> to vector<4x3x16xf32>
    %93 = arith.mulf %90, %92 : vector<4x3x16xf32>
    %94 = vector.shape_cast %93 : vector<4x3x16xf32> to vector<1x4x3x16xf32>
    %cst_36 = arith.constant dense<0.000000e+00> : vector<1xf32>
    %95 = vector.multi_reduction <add>, %94, %cst_36 [1, 2, 3] : vector<1x4x3x16xf32> to vector<1xf32>
    %96 = vector.shape_cast %95 : vector<1xf32> to vector<1x1x1x1xf32>
    %97 = vector.extract %96[0, 0, 0, 0] : f32 from vector<1x1x1x1xf32>
    %c12_i32 = arith.constant 12 : i32
    %98 = vector.broadcast %c12_i32 : i32 to vector<1x16xi32>
    %99 = arith.cmpi slt, %6, %98 : vector<1x16xi32>
    %100 = arith.andi %81, %99 : vector<1x16xi1>
    %101 = arith.extui %100 : vector<1x16xi1> to vector<1x16xi32>
    %102 = arith.sitofp %101 : vector<1x16xi32> to vector<1x16xf32>
    %103 = vector.extract_strided_slice %77 {offsets = [0, 0, 4], sizes = [4, 4, 12], strides = [1, 1, 1]} : vector<4x4x16xf32> to vector<4x4x12xf32>
    %104 = vector.extract_strided_slice %77 {offsets = [0, 0, 0], sizes = [4, 4, 12], strides = [1, 1, 1]} : vector<4x4x16xf32> to vector<4x4x12xf32>
    %105 = arith.subf %103, %104 : vector<4x4x12xf32>
    %106 = math.absf %105 : vector<4x4x12xf32>
    %107 = vector.extract_strided_slice %102 {offsets = [0, 0], sizes = [1, 12], strides = [1, 1]} : vector<1x16xf32> to vector<1x12xf32>
    %108 = vector.shape_cast %107 : vector<1x12xf32> to vector<1x1x12xf32>
    %109 = vector.broadcast %108 : vector<1x1x12xf32> to vector<4x4x12xf32>
    %110 = arith.mulf %106, %109 : vector<4x4x12xf32>
    %111 = vector.shape_cast %110 : vector<4x4x12xf32> to vector<1x4x4x12xf32>
    %cst_37 = arith.constant dense<0.000000e+00> : vector<1xf32>
    %112 = vector.multi_reduction <add>, %111, %cst_37 [1, 2, 3] : vector<1x4x4x12xf32> to vector<1xf32>
    %113 = vector.shape_cast %112 : vector<1xf32> to vector<1x1x1x1xf32>
    %114 = vector.extract %113[0, 0, 0, 0] : f32 from vector<1x1x1x1xf32>
    %cst_38 = arith.constant 0.000000e+00 : f32
    %115 = vector.broadcast %cst_38 : f32 to vector<1x1x128xf32>
    %116 = vector.broadcast %97 : f32 to vector<1x1x128xf32>
    %117 = arith.addf %115, %116 : vector<1x1x128xf32>
    %c0_39 = arith.constant 0 : index
    %c4 = arith.constant 4 : index
    %c0_40 = arith.constant 0 : index
    %118 = vector.load %arg3[%c0_39, %c4, %c0_40] : memref<1x8x128xf32, #tpu.memory_space<vmem>>, vector<1x1x128xf32>
    tpu.vector_store %arg3[%c0_39, %c4, %c0_40], %117 {strides = array<i32>} : memref<1x8x128xf32, #tpu.memory_space<vmem>>, vector<1x1x128xf32>,
    %cst_41 = arith.constant 0.000000e+00 : f32
    %119 = vector.broadcast %cst_41 : f32 to vector<1x1x128xf32>
    %120 = vector.broadcast %114 : f32 to vector<1x1x128xf32>
    %121 = arith.addf %119, %120 : vector<1x1x128xf32>
    %c0_42 = arith.constant 0 : index
    %c5 = arith.constant 5 : index
    %c0_43 = arith.constant 0 : index
    %122 = vector.load %arg3[%c0_42, %c5, %c0_43] : memref<1x8x128xf32, #tpu.memory_space<vmem>>, vector<1x1x128xf32>
    tpu.vector_store %arg3[%c0_42, %c5, %c0_43], %121 {strides = array<i32>} : memref<1x8x128xf32, #tpu.memory_space<vmem>>, vector<1x1x128xf32>,
    return
  }
  func.func @transform_0(%arg0: i32) -> (i32, i32, i32) {
    %c0_i32 = arith.constant 0 : i32
    %c0_i32_0 = arith.constant 0 : i32
    %c0_i32_1 = arith.constant 0 : i32
    return %arg0, %c0_i32, %c0_i32_0 : i32, i32, i32
  }
  func.func @transform_1(%arg0: i32) -> (i32, i32, i32) {
    %c0_i32 = arith.constant 0 : i32
    %c0_i32_0 = arith.constant 0 : i32
    %c0_i32_1 = arith.constant 0 : i32
    return %arg0, %c0_i32, %c0_i32_0 : i32, i32, i32
  }
  func.func @transform_2(%arg0: i32) -> (i32, i32, i32) {
    %c0_i32 = arith.constant 0 : i32
    %c0_i32_0 = arith.constant 0 : i32
    %c0_i32_1 = arith.constant 0 : i32
    return %arg0, %c0_i32, %c0_i32_0 : i32, i32, i32
  }
}

</mosaic_0001>

<bundles_post_ra>
// kernel: multi_scale_edge_loss.1
= control target key start
LH: loop header
LB: loop body
LE: loop exit
PB: predicated region body
PF: predicated region fallthrough
CT: control target
= control target key end

     0   :  { %7 = vsyncpa [#allocation4], 0  ;;  %s1444_s0 = inlined_call_operand.hbm [shape: f32[8,16,16], index: 0, kind: input, shape index: {}]   ;;  %s1445_s1 = inlined_call_operand.hbm [shape: f32[8,16,16], index: 1, kind: input, shape index: {}]   ;;  %s1446_s2 = inlined_call_operand.vmem [shape: f32[2,8,128], index: 2, kind: output, shape index: {}]  }
   0x1   :  { %9 = vsyncpa [#allocation4 + $0x1], 0 }
   0x2   :  { %10 = vsyncpa [#allocation6], 0 }
   0x3   :  { %12 = vsyncpa [#allocation6 + $0x1], 0  ;;  %s1017_s9 = smov 0   ;;  %s1019_s10 = smov 0  }
   0x4   :  { %s1021_s11 = smov 0   ;;  %s1023_s12 = smov 0  }
   0x5 LB: > { %s1036_s13 = sadd.s32 4294967295, %s989_s12   ;;  %s1039_s14 = sadd.s32 1, %s989_s12   ;;  %s989_s12 = sphi %s1023_s12, %s1464_s12   ;;  %s985_s11 = sphi %s1021_s11, %s1463_s11   ;;  %s981_s10 = sphi %s1019_s10, %s1462_s10   ;;  %s977_s9 = sphi %s1017_s9, %s1461_s9  }
   0x6   : > { %s22_s15 = ssub.s32 %s989_s12, %s1039_s14  ;;  %s25_s16 = sadd.s32 1, %s985_s11 }
   0x7   : > { %p23_p0 = scmp.eq.s32.totalorder %s22_s15, 0  ;;  %p32_p1 = scmp.ne.s32.totalorder %s985_s11, %s981_s10 }
   0x8   : > { %p33_p2 = scmp.eq.s32.totalorder %s989_s12, 0  ;;  %p38_p3 = scmp.ne.s32.totalorder %s981_s10, %s977_s9 }
   0x9   : > { %s1049_s17 = scalar_select %p23_p0, %s985_s11, %s25_s16  }
   0xa   : > { %p34_p4 = por %p33_p2, %p32_p1  ;;  %p39_p5 = scmp.eq.s32.totalorder %s1036_s13, 0 }
   0xb   : > { %p849_p6 = scmp.lt.s32.totalorder %s989_s12, 2  ;;  %s1058_s19 = sand.u32 1, %s985_s11  }
   0xc   : > { %p1053_p7 = por %p39_p5, %p38_p3  ;;  %s804_s20 = sshll.u32 %s1058_s19, 6 }
   0xd   : > { %s823_s21 = sshll.u32 %s989_s12, 10  ;;  %s118_s25 = scalar_lea.vmem [#allocation3], %s804_s20 }
   0xe   : > { %s1448_s18 = scalar_select %p1053_p7, 1, 0 }
   0xf   : > { %s1067_s24 = scalar_lea.hbm %s1444_s0, %s823_s21  ;;  %s126_s26 = sshll.u32 %s118_s25, 4  ;;  %s1071_s26 = int_to_ptr.vmem [resolvable:$true] %s126_s26 }
  0x10   : > { %p1073_p8 = pnand %p849_p6, %p34_p4  ;;  %s115_s28 = scalar_lea.sflag [#allocation4], %s1058_s19 }
  0x11   : > { %s891_s29 = scalar_lea.hbm %s1067_s24, 1024  ;;  %s896_s4 = scalar_lea.hbm %s1444_s0, 2048 }
  0x12   : > { %p892_p10 = scmp.ne.s32.totalorder %s1067_s24, %s891_s29  ;;  %p893_p11 = pneg %p1073_p8 }
  0x13   : > { %p897_p0 = scmp.lt.u32.totalorder %s1067_s24, %s1444_s0  ;;  %p898_p1 = scmp.lt.u32.totalorder %s896_s4, %s891_s29 }
  0x14   : > { %p894_p12 = pnand %p893_p11, %p892_p10  ;;  %p900_p3 = scmp.lt.u32.totalorder %s891_s29, %s1067_s24 }
  0x15   : > { %p899_p2 = por %p898_p1, %p897_p0 }
  0x16   : > { %p895_p13 = pneg %p894_p12 }
  0x17   : > { %p901_p4 = por %p900_p3, %p899_p2 }
  0x19   : > { %p902_p5 = pnand %p901_p4, %p895_p13 }
  0x1b   : > { %905 = shalt.err (!%p902_p5)
}
  0x1c   : > { %s906_s7 = scalar_lea.vmem %s1071_s26, 1024  ;;  %s991_s8 = smov [#allocation3]  }
  0x1d   : > { %p907_p6 = scmp.ne.s32.totalorder %s1071_s26, %s906_s7  ;;  %s911_s9 = sshll.u32 %s991_s8, 4  ;;  %s912_s9 = int_to_ptr.vmem [resolvable:$false] %s911_s9 }
  0x1e   : > { %s913_s15 = scalar_lea.vmem %s912_s9, 2048  ;;  %p914_p9 = scmp.lt.s32.totalorder %s1071_s26, %s912_s9 }
  0x1f   : > { %p909_p10 = pnand %p907_p6, %p893_p11  ;;  %p915_p0 = scmp.lt.s32.totalorder %s913_s15, %s906_s7 }
  0x21   : > { %p910_p12 = pneg %p909_p10  ;;  %p916_p1 = por %p915_p0, %p914_p9 }
  0x23   : > { %p917_p2 = pnand %p916_p1, %p910_p12 }
  0x25   : > { %920 = shalt.err (!%p917_p2)
}
  0x26   : > { %s992_s16 = smov 128   ;;  %s993_s22 = smov 8  }
  0x27   : > { %845 = dma.hbm_to_vmem [thread:$0]  (!%p1073_p8), %s1067_s24, 1024, %s1071_s26, %s115_s28, %s992_s16, %s992_s16, %s993_s22  }
  0x28   : > { %p156_p9 = scmp.lt.s32.totalorder %s989_s12, 3  ;;  %s1115_s29 = scalar_lea.hbm %s1445_s1, %s823_s21 }
  0x29   : > { %p1450_p13 = scmp.ge.s32.totalorder %s989_s12, 1  ;;  %s140_s3 = scalar_lea.vmem [#allocation5], %s804_s20 }
  0x2a   : > { %s148_s4 = sshll.u32 %s140_s3, 4  ;;  %s137_s24 = scalar_lea.sflag [#allocation6], %s1058_s19  ;;  %s1125_s4 = int_to_ptr.vmem [resolvable:$true] %s148_s4 }
  0x2b   : > { %p1119_p3 = pnand %p1450_p13, %p156_p9  ;;  %s921_s26 = scalar_lea.hbm %s1115_s29, 1024 }
  0x2c   : > { %p922_p4 = scmp.ne.s32.totalorder %s1115_s29, %s921_s26  ;;  %s926_s28 = scalar_lea.hbm %s1445_s1, 2048 }
  0x2d   : > { %p927_p10 = scmp.lt.u32.totalorder %s1115_s29, %s1445_s1  ;;  %p928_p12 = scmp.lt.u32.totalorder %s926_s28, %s921_s26 }
  0x2e   : > { %p924_p5 = pnand %p922_p4, %p893_p11  ;;  %p930_p1 = scmp.lt.u32.totalorder %s921_s26, %s1115_s29 }
  0x2f   : > { %p929_p0 = por %p928_p12, %p927_p10 }
  0x30   : > { %p925_p6 = pneg %p924_p5 }
  0x31   : > { %p931_p2 = por %p930_p1, %p929_p0 }
  0x33   : > { %p932_p9 = pnand %p931_p2, %p925_p6 }
  0x35   : > { %935 = shalt.err (!%p932_p9)
}
  0x36   : > { %s936_s20 = scalar_lea.vmem %s1125_s4, 1024  ;;  %s994_s7 = smov [#allocation5]  }
  0x37   : > { %p937_p13 = scmp.ne.s32.totalorder %s1125_s4, %s936_s20  ;;  %s941_s8 = sshll.u32 %s994_s7, 4  ;;  %s942_s8 = int_to_ptr.vmem [resolvable:$false] %s941_s8 }
  0x38   : > { %s943_s9 = scalar_lea.vmem %s942_s8, 2048  ;;  %p944_p7 = scmp.lt.s32.totalorder %s1125_s4, %s942_s8 }
  0x39   : > { %p939_p4 = pnand %p937_p13, %p893_p11  ;;  %p945_p10 = scmp.lt.s32.totalorder %s943_s9, %s936_s20 }
  0x3b   : > { %p940_p5 = pneg %p939_p4  ;;  %p946_p12 = por %p945_p10, %p944_p7 }
  0x3d   : > { %p947_p0 = pnand %p946_p12, %p940_p5 }
  0x3f   : > { %950 = shalt.err (!%p947_p0)
}
  0x40   : > { %848 = dma.hbm_to_vmem [thread:$0]  (!%p1073_p8), %s1115_s29, 1024, %s1125_s4, %s137_s24, %s992_s16, %s992_s16, %s993_s22  }
  0x41   : > { %160 = sbr.rel (%p1119_p3) target bundleno = 572 (0x23c), region = 28  ;;  %s162_s15 = sand.u32 (!%p1119_p3), 1, %s981_s10  }
  0x42   : > { %s813_s23 = sshll.u32 (!%p1119_p3), %s162_s15, 6  ;;  %s163_s25 = scalar_lea.sflag (!%p1119_p3), [#allocation4], %s162_s15 }
  0x43   : > { %s1159_s3 = scalar_lea.vmem (!%p1119_p3), [#allocation3], %s813_s23  ;;  %p1452_p7 = scmp.ne.s32.totalorder (!%p1119_p3), %s1448_s18, 0 }
  0x48   : > { %968 = dma.done.wait (%p1452_p7), %s163_s25, 1024  }
  0x49   : > { %970 = vsyncadd (%p1452_p7), %s163_s25, 4294966272  ;;  %s172_s19 = scalar_lea.sflag [#allocation6], %s162_s15  ;;  %s1165_s27 = scalar_lea.vmem [#allocation5], %s813_s23 }
  0x4a   : > { %972 = dma.done.wait (%p1452_p7), %s172_s19, 1024  }
  0x4b   : > { %974 = vsyncadd (%p1452_p7), %s172_s19, 4294966272  ;;  %v240_v0 = vlaneseq  ;;  %v209_v2 = vld [vmem:[%s1159_s3 + $0x10] sm:$0xff]  ;;  %vm231_vm0 = vcmask 130048   ;;  %v207_v4 = vld [vmem:[%s1159_s3] sm:$0xff]  ;;  %s995_s18 = smov 1   ;;  %s996_s16 = smov 2  }
  0x4c   : > { %v217_v3 = vld [vmem:[%s1165_s27 + $0x10] sm:$0xff]  ;;  %v215_v7 = vld [vmem:[%s1165_s27] sm:$0xff]  ;;  %v210_v8 = vld [vmem:[%s1159_s3 + $0x18] sm:$0xff]  ;;  %s997_s22 = smov 4   ;;  %v998_v40 = vmov 0.0   ;;  %s999_s29 = smov 127  }
  0x4d   : > { %v1171_v1 = vand.u32 127, %v240_v0  ;;  %v1177_v6 = vsub.f32 %v209_v2, %v217_v3  ;;  %v218_v9 = vld [vmem:[%s1165_s27 + $0x18] sm:$0xff]  ;;  %v1182_v10 = vsub.f32 %v207_v4, %v215_v7  ;;  %v208_v12 = vld [vmem:[%s1159_s3 + $0x8] sm:$0xff]  ;;  %v211_v18 = vld [vmem:[%s1159_s3 + $0x20] sm:$0xff]  ;;  %vm250_vm10 = vcmask 1040384   ;;  %s1000_s30 = smov 126  }
  0x4e   : > { %v1184_v11 = vsub.f32 %v210_v8, %v218_v9  ;;  %v216_v13 = vld [vmem:[%s1165_s27 + $0x8] sm:$0xff]  ;;  %v219_v19 = vld [vmem:[%s1165_s27 + $0x20] sm:$0xff]  ;;  %v213_v22 = vld [vmem:[%s1159_s3 + $0x30] sm:$0xff]  ;;  %s1001_s4 = smov 124   ;;  %vm295_vm11 = vcmask 1046528   ;;  %vm317_vm12 = vcmask 129024  }
  0x4f   : > { %v451_v5 = vand.u32 1, %v1171_v1  ;;  %v212_v14 = vld [vmem:[%s1159_s3 + $0x28] sm:$0xff]  ;;  %vm453_vm1 = vcmp.lt.s32.totalorder %v1171_v1, 16  ;;  %v584_v15 = vand.u32 3, %v1171_v1  ;;  %345 = vrot.lane.b32.xlu1 %v1177_v6, %s995_s18  ;;  %234 = vst.msk [vmem:[#allocation2 + $0x10] sm:$0xff] %vm231_vm0, %v1177_v6  ;;  %v1195_v16 = vsub.f32 %v208_v12, %v216_v13  ;;  %341 = vrot.lane.b32.xlu0 %v1182_v10, %s995_s18  ;;  %232 = vst.msk [vmem:[#allocation2] sm:$0xff] %vm231_vm0, %v1182_v10 }
  0x50   : > { %v220_v17 = vld [vmem:[%s1165_s27 + $0x28] sm:$0xff]  ;;  %235 = vst.msk [vmem:[#allocation2 + $0x18] sm:$0xff] %vm231_vm0, %v1184_v11  ;;  %v1208_v21 = vsub.f32 %v211_v18, %v219_v19  ;;  %v221_v23 = vld [vmem:[%s1165_s27 + $0x30] sm:$0xff]  ;;  %v214_v24 = vld [vmem:[%s1159_s3 + $0x38] sm:$0xff]  ;;  %vm509_vm6 = vcmp.lt.s32.totalorder %v1171_v1, 14  ;;  %vm642_vm8 = vcmp.lt.s32.totalorder %v1171_v1, 12 }
  0x51   : > { %v1206_v20 = vsub.f32 %v212_v14, %v220_v17  ;;  %vm1213_vm2 = vcmp.eq.s32.totalorder %v451_v5, 0  ;;  %233 = vst.msk [vmem:[#allocation2 + $0x8] sm:$0xff] %vm231_vm0, %v1195_v16  ;;  %v1219_v26 = vsub.f32 %v213_v22, %v221_v23  ;;  %v222_v27 = vld [vmem:[%s1165_s27 + $0x38] sm:$0xff]  ;;  %vm1236_vm4 = vcmp.eq.s32.totalorder %v584_v15, 0  ;;  %p202_p8 = scmp.lt.s32.totalorder %s1036_s13, 1 }
  0x52   : > { %vm1226_vm3 = vmand %vm1213_vm2, %vm453_vm1  ;;  %236 = vst.msk [vmem:[#allocation2 + $0x20] sm:$0xff] %vm231_vm0, %v1208_v21  ;;  %v1234_v29 = vsub.f32 %v214_v24, %v222_v27  ;;  %v251_v3 = vrot.slane %v1182_v10, 7  ;;  %v252_v4 = vrot.slane %v1195_v16, 7  ;;  %v254_v8 = vrot.slane %v1177_v6, 7 }
  0x53   : > { %237 = vst.msk [vmem:[#allocation2 + $0x28] sm:$0xff] %vm231_vm0, %v1206_v20  ;;  %347 = vrot.lane.b32.xlu1 %v1184_v11, %s995_s18  ;;  %238 = vst.msk [vmem:[#allocation2 + $0x30] sm:$0xff] %vm231_vm0, %v1219_v26  ;;  %343 = vrot.lane.b32.xlu0 %v1195_v16, %s995_s18  ;;  %v255_v9 = vrot.slane %v1184_v11, 7  ;;  %vm413_vm13 = vcmask 121856   ;;  %vm625_vm14 = vcmask 124928   ;;  %vm557_vm15 = vcmask 113664  }
  0x54   : > { %vm1248_vm5 = vmand %vm1236_vm4, %vm453_vm1  ;;  %239 = vst.msk [vmem:[#allocation2 + $0x38] sm:$0xff] %vm231_vm0, %v1234_v29  ;;  %v253_v14 = vsel %vm250_vm10, %v251_v3, %v252_v4  ;;  %v271_v22 = vsub.f32 %v1182_v10, %v251_v3  ;;  %v260_v4 = vrot.slane %v1219_v26, 7  ;;  %s1466_s13 = smov (!%p202_p8, %s1036_s13), 1 }
  0x55   : > { %vm510_vm7 = vmand %vm1213_vm2, %vm509_vm6  ;;  %v256_v19 = vsel %vm250_vm10, %v254_v8, %v255_v9  ;;  %v272_v25 = vsub.f32 %v1195_v16, %v253_v14  ;;  %s815_s24 = sshll.u32 %s1466_s13, 3 }
  0x56   : > { %v817_v41 = vsel %vm510_vm7, 1.0, %v998_v40  ;;  %vm643_vm9 = vmand %vm1236_vm4, %vm642_vm8  ;;  %s1421_s21 = scalar_lea.vmem %s1446_s2, %s815_s24 }
  0x57   : > { %351 = vrot.lane.b32.xlu1 %v1206_v20, %s995_s18  ;;  %349 = vrot.lane.b32.xlu0 %v1208_v21, %s995_s18  ;;  %v1262_v33 = vld [vmem:[#allocation2 + $0x10] ss:$2 sm:$0xff]  ;;  %v819_v42 = vsel %vm643_vm9, 1.0, %v998_v40  ;;  %206 = vst [vmem:[%s1421_s21] sm:$0xff] %v998_v40 }
  0x58   : > { %v1260_v32 = vld [vmem:[#allocation2] ss:$2 sm:$0xff]  ;;  %v1268_v35 = vld [vmem:[#allocation2 + $0x10] ss:$4 sm:$0xf] }
  0x59   : > { %v1266_v34 = vld [vmem:[#allocation2] ss:$4 sm:$0xf] }
  0x5a   : > { %v1272_v36 = vld [vmem:[#allocation2 + $0x20] ss:$4 sm:$0xf] }
  0x5b   : > { %513 = vrot.lane.b32.xlu1 %v1260_v32, %s996_s16  ;;  %515 = vrot.lane.b32.xlu0 %v1262_v33, %s996_s16  ;;  %v1274_v37 = vld [vmem:[#allocation2 + $0x20] ss:$2 sm:$0xff]  ;;  %v1279_v38 = vld [vmem:[#allocation2 + $0x30] ss:$2 sm:$0xff] }
  0x5c   : > { %v1287_v39 = vld [vmem:[#allocation2 + $0x30] ss:$4 sm:$0xf] }
  0x5f   : > { %646 = vrot.lane.b32.xlu1 %v1266_v34, %s997_s22  ;;  %648 = vrot.lane.b32.xlu0 %v1268_v35, %s997_s22 }
  0x63   : > { %650 = vrot.lane.b32.xlu1 %v1272_v36, %s997_s22  ;;  %517 = vrot.lane.b32.xlu0 %v1274_v37, %s996_s16 }
  0x67   : > { %519 = vrot.lane.b32.xlu1 %v1279_v38, %s996_s16  ;;  %353 = vrot.lane.b32.xlu0 %v1219_v26, %s995_s18 }
  0x6b   : > { %652 = vrot.lane.b32.xlu1 %v1287_v39, %s997_s22  ;;  %534 = vrot.lane.b32.xlu0 %v817_v41, %s996_s16  ;;  %v273_v41 = vsub.f32 %v1177_v6, %v254_v8 }
  0x6f   : > { %355 = vrot.lane.b32.xlu1 %v1234_v29, %s995_s18  ;;  %667 = vrot.lane.b32.xlu0 %v819_v42, %s997_s22  ;;  %v274_v42 = vsub.f32 %v1184_v11, %v256_v19 }
  0xc1   : > { %v346_v43 = vpop.permute.xlu1 %345  ;;  %v342_v44 = vpop.permute.xlu0 %341 }
  0xc2   : > { %v365_v45 = vsub.f32 %v1182_v10, %v342_v44  ;;  %v367_v46 = vsub.f32 %v1177_v6, %v346_v43  ;;  %v280_v6 = vand.u32 2147483647, %v272_v25 }
  0xc4   : > { %v373_v47 = vand.u32 2147483647, %v365_v45  ;;  %v375_v51 = vand.u32 2147483647, %v367_v46  ;;  %v257_v45 = vrot.slane %v1208_v21, 7 }
  0xc5   : > { %v348_v48 = vpop.permute.xlu1 %347  ;;  %v344_v49 = vpop.permute.xlu0 %343  ;;  %v279_v46 = vand.u32 2147483647, %v271_v22 }
  0xc6   : > { %v366_v50 = vsub.f32 %v1195_v16, %v344_v49  ;;  %389 = vrot.lane.b32.xlu0 %v373_v47, %s999_s29  ;;  %v368_v52 = vsub.f32 %v1184_v11, %v348_v48  ;;  %v258_v16 = vrot.slane %v1206_v20, 7 }
  0xc8   : > { %v374_v53 = vand.u32 2147483647, %v366_v50  ;;  %v376_v57 = vand.u32 2147483647, %v368_v52 }
  0xc9   : > { %v352_v54 = vpop.permute.xlu1 %351  ;;  %v350_v55 = vpop.permute.xlu0 %349 }
  0xca   : > { %v369_v56 = vsub.f32 %v1208_v21, %v350_v55  ;;  %393 = vrot.lane.b32.xlu0 %v375_v51, %s999_s29  ;;  %391 = vrot.lane.b32.xlu1 %v374_v53, %s999_s29  ;;  %v370_v58 = vsub.f32 %v1206_v20, %v352_v54  ;;  %v281_v53 = vand.u32 2147483647, %v273_v41  ;;  %v282_v54 = vand.u32 2147483647, %v274_v42 }
  0xcc   : > { %v377_v59 = vand.u32 2147483647, %v369_v56  ;;  %v378_v62 = vand.u32 2147483647, %v370_v58  ;;  %v259_v56 = vsel %vm250_vm10, %v257_v45, %v258_v16  ;;  %v297_v58 = vrot.slane %v280_v6, 1 }
  0xcd   : > { %v514_v60 = vpop.permute.xlu1 %513  ;;  %v516_v61 = vpop.permute.xlu0 %515  ;;  %v299_v3 = vrot.slane %v281_v53, 1 }
  0xce   : > { %395 = vrot.lane.b32.xlu1 %v376_v57, %s999_s29  ;;  %397 = vrot.lane.b32.xlu0 %v377_v59, %s999_s29  ;;  %v525_v12 = vsub.f32 %v1260_v32, %v514_v60  ;;  %v526_v43 = vsub.f32 %v1262_v33, %v516_v61  ;;  %v296_v57 = vrot.slane %v279_v46, 1 }
  0xd0   : > { %v529_v23 = vand.u32 2147483647, %v525_v12  ;;  %v530_v51 = vand.u32 2147483647, %v526_v43 }
  0xd1   : > { %v647_v63 = vpop.permute.xlu1 %646  ;;  %v649_v0 = vpop.permute.xlu0 %648 }
  0xd2   : > { %399 = vrot.lane.b32.xlu1 %v378_v62, %s999_s29  ;;  %v658_v24 = vsub.f32 %v1266_v34, %v647_v63  ;;  %v659_v52 = vsub.f32 %v1268_v35, %v649_v0  ;;  %v275_v0 = vsub.f32 %v1208_v21, %v257_v45 }
  0xd4   : > { %v662_v47 = vand.u32 2147483647, %v658_v24  ;;  %v663_v63 = vand.u32 2147483647, %v659_v52 }
  0xd5   : > { %v651_v1 = vpop.permute.xlu1 %650  ;;  %v1308_v2 = vpop.permute.xlu0 %517 }
  0xd6   : > { %v660_v48 = vsub.f32 %v1272_v36, %v651_v1  ;;  %v527_v59 = vsub.f32 %v1274_v37, %v1308_v2  ;;  %v276_v1 = vsub.f32 %v1206_v20, %v259_v56  ;;  %v261_v2 = vrot.slane %v1234_v29, 7 }
  0xd7   : > { %v462_v20 = vrot.slane %v1262_v33, 7 }
  0xd8   : > { %v664_v55 = vand.u32 2147483647, %v660_v48  ;;  %v531_v8 = vand.u32 2147483647, %v527_v59  ;;  %v262_v14 = vsel %vm250_vm10, %v260_v4, %v261_v2  ;;  %v284_v24 = vand.u32 2147483647, %v276_v1 }
  0xd9   : > { %v520_v5 = vpop.permute.xlu1 %519  ;;  %v354_v7 = vpop.permute.xlu0 %353  ;;  %v278_v41 = vsub.f32 %v1234_v29, %v262_v14  ;;  %v470_v43 = vsub.f32 %v1262_v33, %v462_v20  ;;  %v594_v14 = vrot.slane %v1268_v35, 7 }
  0xda   : > { %v371_v13 = vsub.f32 %v1219_v26, %v354_v7  ;;  %v528_v11 = vsub.f32 %v1279_v38, %v520_v5  ;;  %v298_v5 = vsel %vm295_vm11, %v296_v57, %v297_v58  ;;  %v300_v7 = vrot.slane %v282_v54, 1 }
  0xdb   : > { %v316_v19 = vsel %vm231_vm0, %v298_v5, 0.0  ;;  %v286_v6 = vand.u32 2147483647, %v278_v41 }
  0xdc   : > { %v379_v15 = vand.u32 2147483647, %v371_v13  ;;  %v532_v61 = vand.u32 2147483647, %v528_v11  ;;  %v461_v13 = vrot.slane %v1260_v32, 7  ;;  %v301_v25 = vsel %vm295_vm11, %v299_v3, %v300_v7 }
  0xdd   : > { %v1317_v17 = vpop.permute.xlu1 %652  ;;  %v1319_v18 = vpop.permute.xlu0 %534  ;;  %v320_v45 = vsel %vm231_vm0, %v301_v25, 0.0  ;;  %v464_v11 = vrot.slane %v1279_v38, 7  ;;  %v322_v33 = vsel %vm317_vm12, %v300_v7, 0.0 }
  0xde   : > { %401 = vrot.lane.b32.xlu0 %v379_v15, %s999_s29  ;;  %v537_v30 = vmul.f32 %v1319_v18, %v529_v23  ;;  %v538_v60 = vmul.f32 %v1319_v18, %v530_v51  ;;  %v661_v9 = vsub.f32 %v1287_v39, %v1317_v17  ;;  %v540_v21 = vmul.f32 %v1319_v18, %v532_v61 }
  0xdf   : > { %v283_v15 = vand.u32 2147483647, %v275_v0  ;;  %v318_v17 = vsel %vm317_vm12, %v297_v58, 0.0  ;;  %v539_v23 = vmul.f32 %v1319_v18, %v531_v8  ;;  %v472_v54 = vsub.f32 %v1279_v38, %v464_v11 }
  0xe0   : > { %v665_v22 = vand.u32 2147483647, %v661_v9  ;;  %v319_v42 = vadd.f32 %v318_v17, %v316_v19  ;;  %v595_v19 = vrot.slane %v1272_v36, 7 }
  0xe1   : > { %v356_v27 = vpop.permute.xlu1 %355  ;;  %v1330_v44 = vpop.permute.xlu0 %667  ;;  %v302_v46 = vrot.slane %v283_v15, 1  ;;  %v593_v15 = vrot.slane %v1266_v34, 7 }
  0xe2   : > { %v372_v10 = vsub.f32 %v1234_v29, %v356_v27  ;;  %545 = vrot.lane.b32.xlu0 %v537_v30, %s1000_s30  ;;  %v670_v50 = vmul.f32 %v1330_v44, %v662_v47  ;;  %v672_v62 = vmul.f32 %v1330_v44, %v664_v55  ;;  %v671_v12 = vmul.f32 %v1330_v44, %v663_v63 }
  0xe3   : > { %v463_v27 = vrot.slane %v1274_v37, 7  ;;  %v277_v30 = vsub.f32 %v1219_v26, %v260_v4  ;;  %v673_v18 = vmul.f32 %v1330_v44, %v665_v22  ;;  %v303_v47 = vrot.slane %v284_v24, 1 }
  0xe4   : > { %v380_v49 = vand.u32 2147483647, %v372_v10  ;;  %v469_v10 = vsub.f32 %v1260_v32, %v461_v13  ;;  %v321_v26 = vadd.f32 %v320_v45, %v319_v42  ;;  %v816_v32 = vsel %vm1226_vm3, 1.0, %v998_v40 }
  0xe5   : > { %v471_v48 = vsub.f32 %v1274_v37, %v463_v27  ;;  %v285_v16 = vand.u32 2147483647, %v277_v30  ;;  %v304_v44 = vsel %vm295_vm11, %v302_v46, %v303_v47  ;;  %v306_v37 = vrot.slane %v286_v6, 1 }
  0xe6   : > { %403 = vrot.lane.b32.xlu1 %v380_v49, %s999_s29  ;;  %678 = vrot.lane.b32.xlu0 %v670_v50, %s1001_s4  ;;  %v474_v49 = vand.u32 2147483647, %v470_v43  ;;  %v473_v29 = vand.u32 2147483647, %v469_v10  ;;  %v323_v52 = vadd.f32 %v322_v33, %v321_v26  ;;  %v324_v53 = vsel %vm231_vm0, %v304_v44, 0.0 }
  0xe7   : > { %v475_v50 = vand.u32 2147483647, %v471_v48  ;;  %v305_v51 = vrot.slane %v285_v16, 1  ;;  %v326_v59 = vsel %vm317_vm12, %v303_v47, 0.0  ;;  %v330_v7 = vsel %vm317_vm12, %v306_v37, 0.0 }
  0xe8   : > { %v477_v55 = vmul.f32 %v816_v32, %v473_v29  ;;  %v478_v56 = vmul.f32 %v816_v32, %v474_v49  ;;  %v325_v58 = vadd.f32 %v324_v53, %v323_v52  ;;  %v601_v24 = vsub.f32 %v1266_v34, %v593_v15 }
  0xe9   : > { %v307_v57 = vsel %vm295_vm11, %v305_v51, %v306_v37  ;;  %v479_v28 = vmul.f32 %v816_v32, %v475_v50  ;;  %v603_v30 = vsub.f32 %v1272_v36, %v595_v19  ;;  %v596_v43 = vrot.slane %v1287_v39, 7 }
  0xea   : > { %547 = vrot.lane.b32.xlu1 %v538_v60, %s1000_s30  ;;  %682 = vrot.lane.b32.xlu0 %v672_v62, %s1001_s4  ;;  %v476_v60 = vand.u32 2147483647, %v472_v54  ;;  %v485_v61 = vrot.slane %v477_v55, 1  ;;  %v486_v62 = vrot.slane %v478_v56, 1  ;;  %v327_v63 = vadd.f32 %v326_v59, %v325_v58 }
  0xeb   : > { %v328_v0 = vsel %vm231_vm0, %v307_v57, 0.0  ;;  %v487_v3 = vrot.slane %v479_v28, 1  ;;  %v605_v42 = vand.u32 2147483647, %v601_v24  ;;  %v818_v10 = vsel %vm1248_vm5, 1.0, %v998_v40 }
  0xec   : > { %v480_v1 = vmul.f32 %v816_v32, %v476_v60  ;;  %v493_v4 = vsel %vm317_vm12, %v485_v61, 0.0  ;;  %v494_v38 = vsel %vm317_vm12, %v486_v62, 0.0  ;;  %v329_v2 = vadd.f32 %v328_v0, %v327_v63 }
  0xed   : > { %v495_v5 = vadd.f32 %v494_v38, %v493_v4  ;;  %v496_v9 = vsel %vm317_vm12, %v487_v3, 0.0  ;;  %v607_v46 = vand.u32 2147483647, %v603_v30  ;;  %v604_v47 = vsub.f32 %v1287_v39, %v596_v43 }
  0xee   : > { %680 = vrot.lane.b32.xlu1 %v671_v12, %s1001_s4  ;;  %551 = vrot.lane.b32.xlu0 %v540_v21, %s1000_s30  ;;  %v488_v8 = vrot.slane %v480_v1, 1  ;;  %v331_v12 = vadd.f32 %v330_v7, %v329_v2  ;;  %v609_v48 = vmul.f32 %v818_v10, %v605_v42  ;;  %vm690_vm0 = vcmask 93184  }
  0xef   : > { %v497_v21 = vadd.f32 %v496_v9, %v495_v5  ;;  %v608_v49 = vand.u32 2147483647, %v604_v47  ;;  %v611_v29 = vmul.f32 %v818_v10, %v607_v46 }
  0xf0   : > { %v498_v20 = vsel %vm317_vm12, %v488_v8, 0.0  ;;  %v617_v11 = vrot.slane %v609_v48, 1 }
  0xf1   : > { %v499_v13 = vadd.f32 %v498_v20, %v497_v21  ;;  %v612_v51 = vmul.f32 %v818_v10, %v608_v49  ;;  %v619_v37 = vrot.slane %v611_v29, 1 }
  0xf2   : > { %549 = vrot.lane.b32.xlu1 %v539_v23, %s1000_s30  ;;  %v602_v23 = vsub.f32 %v1268_v35, %v594_v14  ;;  %v626_v39 = vsel %vm625_vm14, %v617_v11, 0.0 }
  0xf3   : > { %v620_v58 = vrot.slane %v612_v51, 1  ;;  %v629_v59 = vsel %vm625_vm14, %v619_v37, 0.0 }
  0xf4   : > { %v606_v41 = vand.u32 2147483647, %v602_v23 }
  0xf5   : > { %v631_v1 = vsel %vm625_vm14, %v620_v58, 0.0 }
  0xf6   : > { %684 = vrot.lane.b32.xlu1 %v673_v18, %s1001_s4  ;;  %v610_v16 = vmul.f32 %v818_v10, %v606_v41 }
  0xf8   : > { %v618_v33 = vrot.slane %v610_v16, 1 }
  0xfa   : > { %v627_v52 = vsel %vm625_vm14, %v618_v33, 0.0 }
  0xfb   : > { %v628_v55 = vadd.f32 %v627_v52, %v626_v39 }
  0xfd   : > { %v630_v62 = vadd.f32 %v629_v59, %v628_v55 }
  0xff   : > { %v632_v38 = vadd.f32 %v631_v1, %v630_v62 }
 0x10d   : > { %332 = vadd.xlane.f32.xlu0 %v331_v12 }
 0x111   : > { %500 = vadd.xlane.f32.xlu0 %v499_v13 }
 0x138   : > { %v390_v17 = vpop.permute.xlu0 %389 }
 0x139   : > { %v414_v25 = vsel %vm413_vm13, %v390_v17, 0.0 }
 0x13c   : > { %v392_v22 = vpop.permute.xlu1 %391  ;;  %v394_v45 = vpop.permute.xlu0 %393 }
 0x13d   : > { %v415_v27 = vsel %vm413_vm13, %v392_v22, 0.0  ;;  %v417_v34 = vsel %vm413_vm13, %v394_v45, 0.0 }
 0x13e   : > { %v416_v18 = vadd.f32 %v415_v27, %v414_v25 }
 0x140   : > { %v396_v35 = vpop.permute.xlu1 %395  ;;  %v418_v6 = vadd.f32 %v417_v34, %v416_v18  ;;  %v398_v26 = vpop.permute.xlu0 %397 }
 0x141   : > { %v419_v36 = vsel %vm413_vm13, %v396_v35, 0.0  ;;  %v421_v32 = vsel %vm413_vm13, %v398_v26, 0.0 }
 0x142   : > { %v420_v31 = vadd.f32 %v419_v36, %v418_v6 }
 0x144   : > { %v400_v44 = vpop.permute.xlu1 %399  ;;  %v422_v53 = vadd.f32 %v421_v32, %v420_v31 }
 0x145   : > { %v423_v54 = vsel %vm413_vm13, %v400_v44, 0.0 }
 0x146   : > { %v424_v60 = vadd.f32 %v423_v54, %v422_v53 }
 0x150   : > { %v402_v50 = vpop.permute.xlu0 %401 }
 0x151   : > { %v425_v56 = vsel %vm413_vm13, %v402_v50, 0.0 }
 0x152   : > { %v426_v28 = vadd.f32 %v425_v56, %v424_v60 }
 0x154   : > { %v546_v57 = vpop.permute.xlu0 %545 }
 0x155   : > { %v558_v8 = vsel %vm557_vm15, %v546_v57, 0.0 }
 0x158   : > { %v404_v61 = vpop.permute.xlu1 %403  ;;  %v679_v63 = vpop.permute.xlu0 %678 }
 0x159   : > { %v427_v0 = vsel %vm413_vm13, %v404_v61, 0.0  ;;  %v691_v13 = vsel %vm690_vm0, %v679_v63, 0.0 }
 0x15a   : > { %v428_v3 = vadd.f32 %v427_v0, %v426_v28 }
 0x15c   : > { %429 = vadd.xlane.f32.xlu1 %v428_v3  ;;  %v548_v4 = vpop.permute.xlu1 %547  ;;  %v683_v2 = vpop.permute.xlu0 %682 }
 0x15d   : > { %v559_v7 = vsel %vm557_vm15, %v548_v4, 0.0  ;;  %v694_v24 = vsel %vm690_vm0, %v683_v2, 0.0 }
 0x15e   : > { %v560_v12 = vadd.f32 %v559_v7, %v558_v8 }
 0x160   : > { %v681_v5 = vpop.permute.xlu1 %680  ;;  %633 = vadd.xlane.f32.xlu1 %v632_v38  ;;  %v552_v21 = vpop.permute.xlu0 %551 }
 0x161   : > { %v692_v9 = vsel %vm690_vm0, %v681_v5, 0.0  ;;  %v563_v17 = vsel %vm557_vm15, %v552_v21, 0.0 }
 0x162   : > { %v693_v15 = vadd.f32 %v692_v9, %v691_v13 }
 0x164   : > { %v550_v20 = vpop.permute.xlu1 %549  ;;  %v695_v27 = vadd.f32 %v694_v24, %v693_v15 }
 0x165   : > { %v561_v14 = vsel %vm557_vm15, %v550_v20, 0.0 }
 0x166   : > { %v562_v19 = vadd.f32 %v561_v14, %v560_v12 }
 0x168   : > { %v685_v22 = vpop.permute.xlu1 %684  ;;  %v564_v23 = vadd.f32 %v563_v17, %v562_v19 }
 0x169   : > { %v696_v25 = vsel %vm690_vm0, %v685_v22, 0.0 }
 0x16a   : > { %565 = vadd.xlane.f32.xlu0 %v564_v23  ;;  %v697_v30 = vadd.f32 %v696_v25, %v695_v27 }
 0x16e   : > { %698 = vadd.xlane.f32.xlu0 %v697_v30 }
 0x19a   : > { %v333_v41 = vpop.xlane.xlu0 %332 }
 0x19b   : > { %v334_v42 = vrot.slane %v333_v41, 4 }
 0x19d   : > { %v335_v43 = vadd.f32 %v334_v42, %v333_v41 }
 0x19e   : > { %v501_v34 = vpop.xlane.xlu0 %500 }
 0x19f   : > { %v336_v10 = vrot.slane %v335_v43, 2  ;;  %v502_v47 = vrot.slane %v501_v34, 4 }
 0x1a1   : > { %v337_v45 = vadd.f32 %v336_v10, %v335_v43  ;;  %v503_v48 = vadd.f32 %v502_v47, %v501_v34 }
 0x1a3   : > { %v338_v18 = vrot.slane %v337_v45, 1  ;;  %v504_v16 = vrot.slane %v503_v48, 2 }
 0x1a5   : > { %v339_v46 = vadd.f32 %v338_v18, %v337_v45  ;;  %v505_v26 = vadd.f32 %v504_v16, %v503_v48 }
 0x1a7   : > { %826 = vpush %v339_v46  ;;  %v506_v33 = vrot.slane %v505_v26, 1 }
 0x1a9   : > { %v507_v50 = vadd.f32 %v506_v33, %v505_v26 }
 0x1d8   : > { %s827_s28 = spop %826 }
 0x1d9   : > { %v438_v35 = vstv %s827_s28 }
 0x1da   : > { %440 = vst [vmem:[%s1421_s21] sm:$0x1] %v438_v35 }
 0x1e9   : > { %v430_v6 = vpop.xlane.xlu1 %429 }
 0x1ea   : > { %v431_v36 = vrot.slane %v430_v6, 4 }
 0x1ec   : > { %v432_v49 = vadd.f32 %v431_v36, %v430_v6 }
 0x1ed   : > { %v634_v40 = vpop.xlane.xlu1 %633 }
 0x1ee   : > { %v433_v29 = vrot.slane %v432_v49, 2  ;;  %v635_v11 = vrot.slane %v634_v40, 4 }
 0x1f0   : > { %v434_v31 = vadd.f32 %v433_v29, %v432_v49  ;;  %v636_v44 = vadd.f32 %v635_v11, %v634_v40 }
 0x1f2   : > { %v435_v32 = vrot.slane %v434_v31, 1  ;;  %v637_v37 = vrot.slane %v636_v44, 2 }
 0x1f4   : > { %v436_v51 = vadd.f32 %v435_v32, %v434_v31  ;;  %v638_v54 = vadd.f32 %v637_v37, %v636_v44 }
 0x1f6   : > { %828 = vpush %v436_v51  ;;  %v639_v60 = vrot.slane %v638_v54, 1 }
 0x1f7   : > { %v566_v39 = vpop.xlane.xlu0 %565  ;;  %830 = vpush %v507_v50 }
 0x1f8   : > { %v567_v52 = vrot.slane %v566_v39, 4  ;;  %v640_v0 = vadd.f32 %v639_v60, %v638_v54 }
 0x1fa   : > { %v568_v53 = vadd.f32 %v567_v52, %v566_v39 }
 0x1fb   : > { %v699_v55 = vpop.xlane.xlu0 %698 }
 0x1fc   : > { %v569_v56 = vrot.slane %v568_v53, 2  ;;  %v700_v57 = vrot.slane %v699_v55, 4 }
 0x1fe   : > { %v701_v58 = vadd.f32 %v700_v57, %v699_v55  ;;  %v570_v59 = vadd.f32 %v569_v56, %v568_v53 }
 0x200   : > { %v702_v28 = vrot.slane %v701_v58, 2  ;;  %v571_v61 = vrot.slane %v570_v59, 1 }
 0x202   : > { %v703_v62 = vadd.f32 %v702_v28, %v701_v58  ;;  %v572_v63 = vadd.f32 %v571_v61, %v570_v59 }
 0x204   : > { %832 = vpush %v572_v63  ;;  %v704_v1 = vrot.slane %v703_v62, 1 }
 0x205   : > { %834 = vpush %v640_v0 }
 0x206   : > { %v705_v3 = vadd.f32 %v704_v1, %v703_v62 }
 0x208   : > { %836 = vpush %v705_v3 }
 0x227   : > { %s829_s13 = spop %828 }
 0x228   : > { %v441_v4 = vstv %s829_s13  ;;  %s831_s5 = spop %830 }
 0x229   : > { %443 = vst [vmem:[%s1421_s21 + $0x1] sm:$0x1] %v441_v4  ;;  %v574_v38 = vstv %s831_s5 }
 0x22a   : > { %576 = vst [vmem:[%s1421_s21 + $0x2] sm:$0x1] %v574_v38 }
 0x235   : > { %s833_s6 = spop %832 }
 0x236   : > { %v577_v2 = vstv %s833_s6  ;;  %s835_s20 = spop %834 }
 0x237   : > { %579 = vst [vmem:[%s1421_s21 + $0x3] sm:$0x1] %v577_v2  ;;  %v707_v5 = vstv %s835_s20 }
 0x238   : > { %709 = vst [vmem:[%s1421_s21 + $0x4] sm:$0x1] %v707_v5 }
 0x239   : > { %s837_s7 = spop %836 }
 0x23a   : > { %v710_v7 = vstv %s837_s7 }
 0x23b   : > { %712 = vst [vmem:[%s1421_s21 + $0x5] sm:$0x1] %v710_v7 }
 0x23c PF: > { %p15_p11 = scmp.ge.s32.totalorder %s1039_s14, 4   ;;  %s1461_s9 = smov %s981_s10 }
 0x23d   : > { %s1462_s10 = smov %s985_s11  ;;  %s1463_s11 = smov %s1049_s17 }
 0x23e   : > { %s1464_s12 = smov %s1039_s14  ;;  %17 = sbr.rel (!%p15_p11) target bundleno = 5 (0x5), region = 84 }
 0x245   :  { %732 = vsyncpa [#allocation4], 1 }
 0x246   :  { %734 = vsyncpa [#allocation4 + $0x1], 1 }
 0x247   :  { %735 = vsyncpa [#allocation6], 1 }
 0x248   :  { %737 = vsyncpa [#allocation6 + $0x1], 1 }

</bundles_post_ra>
